<compile_context>
chip_gen: v6e
topology: v6e:2x2x1
jax: 0.10.0
libtpu: 0.0.40
codegen_flags: <defaults>
</compile_context>

<pallas_src>
import functools

import jax
import jax.numpy as jnp
from jax.experimental import pallas as pl
from jax.experimental.pallas import tpu as pltpu

K_B = 8.617e-05  # Boltzmann constant [eV/K], matches the PyTorch module


def _cdiv(a, b):
    return -(-a // b)


def _gen_rate_loss_kernel(pred_ref, vmask_ref, logexp_ref, out_ref,
                          sum_ref, cnt_ref, *, batch, block_rows, steps_per_core):
    c = pl.program_id(0)            # core-split axis ("parallel", 2 TCs on v7x)
    i = pl.program_id(1)            # per-core batch-tile sweep ("arbitrary")
    nsteps = pl.num_programs(1)

    @pl.when(i == 0)
    def _init():
        sum_ref[...] = jnp.zeros_like(sum_ref)
        cnt_ref[...] = jnp.zeros_like(cnt_ref)

    pred = pred_ref[...].astype(jnp.float32)        # [TB, S]
    vm = vmask_ref[...].astype(jnp.float32)         # [TB, S]  valid_mask.float()
    log_exp = logexp_ref[...]                       # [TB, 1]  precomputed log expected rate
    tb, s = pred.shape

    # Adjacent-step differences via XLU roll; wraparound lane folded straight into vm_next.
    lane = jax.lax.broadcasted_iota(jnp.int32, (tb, s), 1)
    vm_next = jnp.where(lane < (s - 1), pltpu.roll(vm, shift=s - 1, axis=1), 0.0)
    pred_next = pltpu.roll(pred, shift=s - 1, axis=1)
    valid_pairs = vm * vm_next                      # [TB, S]
    observed_diffs = (pred_next - pred) * valid_pairs

    valid_counts = jnp.sum(valid_pairs, axis=1, keepdims=True)               # [TB, 1]
    avg_observed = (jnp.sum(observed_diffs, axis=1, keepdims=True)
                    / jnp.maximum(valid_counts, 1.0))

    # Ragged last tile / duplicated clamp tiles: rows at or past `batch` must not contribute.
    block_idx = c * steps_per_core + i
    rows_left = batch - block_idx * block_rows      # scalar; <= 0 for duplicate clamp tiles
    row_id = jax.lax.broadcasted_iota(jnp.int32, (tb, 1), 0)
    row_valid = row_id < rows_left                  # [TB, 1]

    sel = (avg_observed > 0.0) & (valid_counts > 1.0) & row_valid            # [TB, 1]
    d = jnp.log(jnp.maximum(avg_observed, 1e-10)) - log_exp
    sq = jnp.where(sel, d * d, 0.0)                 # where() blocks NaN/Inf from garbage rows

    sum_ref[...] = sum_ref[...] + jnp.sum(sq, axis=0, keepdims=True)
    cnt_ref[...] = cnt_ref[...] + jnp.sum(sel.astype(jnp.float32), axis=0, keepdims=True)

    @pl.when(i == nsteps - 1)
    def _finalize():
        # Lane-dense (8,128) partial tile per core: lane 0 = partial sum, lane 1 = partial count.
        lane_o = jax.lax.broadcasted_iota(jnp.int32, (8, 128), 1)
        s_b = jnp.broadcast_to(sum_ref[...], (8, 128))
        c_b = jnp.broadcast_to(cnt_ref[...], (8, 128))
        out_ref[...] = jnp.where(lane_o == 0, s_b,
                                 jnp.where(lane_o == 1, c_b,
                                           jnp.zeros((8, 128), jnp.float32)))


def generation_rate_loss(predictions, voltage, thickness, trap_params, valid_mask,
                         temperature: float = 300.0, max_block_rows=None):
    """Pallas TPU implementation of GenerationRateLoss.forward (returns scalar f32)."""
    B, S = predictions.shape
    if S <= 1:
        # static shape check mirrors `if predictions.size(1) > 1`
        return jnp.float32(0.0)

    # --- O(B) per-row physics done once in XLA (tiny), as a single f32 column --------------
    # log(max(exp(clip(x,-20,20)), 1e-10)) == clip(x,-20,20) exactly (exp(-20) > 1e-10).
    e_a = trap_params[:, 3].astype(jnp.float32)
    efield = (jnp.abs(jnp.reshape(voltage, (B,)).astype(jnp.float32))
              / jnp.reshape(thickness, (B,)).astype(jnp.float32))
    exponent = -(e_a - (1e-29 / 1.602e-19) * efield) / (K_B * float(temperature))
    log_exp = jnp.clip(exponent, -20.0, 20.0).reshape(B, 1)

    # --- big operands go in untouched: no pad, no mask dtype copy --------------------------
    mask = jnp.asarray(valid_mask)
    pred_bytes = predictions.dtype.itemsize
    mask_bytes = mask.dtype.itemsize

    # --- batch tile from a VMEM budget (3/4 of physical: ~48 MiB v7x, ~96 MiB v5e/v6e) -----
    try:
        phys = int(getattr(pltpu.get_tpu_info(), "vmem_capacity_bytes", 128 << 20))
    except Exception:
        phys = 128 << 20
    cap = (phys * 3) // 4

    row_bytes = S * (pred_bytes + mask_bytes) + 8            # + log_exp column & slack
    budget = cap - (4 << 20)                                 # headroom: out tiles, scratch, internals
    tb_max = max(32, (budget // (2 * row_bytes)) // 32 * 32) # double-buffered streaming blocks
    if max_block_rows is not None:
        tb_max = min(tb_max, max(32, (int(max_block_rows) // 32) * 32))

    if B <= tb_max:
        tb = B
    else:
        n_tiles = _cdiv(B, tb_max)
        tb = min(tb_max, _cdiv(_cdiv(B, n_tiles), 32) * 32)  # balanced, 32-aligned tiles
    grid_b = _cdiv(B, tb)

    # Split batch tiles across 2 TensorCores (v7x); a harmless serial split on 1-TC chips.
    ncores = 2 if grid_b >= 2 else 1
    steps = _cdiv(grid_b, ncores)
    last_blk = grid_b - 1

    def bmap(c, i):
        # Clamp duplicate tiles from the core split; in-kernel row mask zeroes their effect.
        return (jnp.minimum(c * steps + i, last_blk), 0)

    vmem_limit = int(min(cap, max(32 << 20, 2 * tb * row_bytes + (1 << 20))))

    kernel = functools.partial(_gen_rate_loss_kernel,
                               batch=B, block_rows=tb, steps_per_core=steps)
    out = pl.pallas_call(
        kernel,
        out_shape=jax.ShapeDtypeStruct((ncores * 8, 128), jnp.float32),
        grid=(ncores, steps),
        in_specs=[
            pl.BlockSpec((tb, S), bmap),    # predictions, native dtype
            pl.BlockSpec((tb, S), bmap),    # valid mask, native dtype (bool/int/float)
            pl.BlockSpec((tb, 1), bmap),    # precomputed log expected rate (f32)
        ],
        out_specs=pl.BlockSpec((8, 128), lambda c, i: (c, 0)),
        scratch_shapes=[pltpu.VMEM((1, 1), jnp.float32),     # per-core running sum of sq diffs
                        pltpu.VMEM((1, 1), jnp.float32)],    # per-core running selected count
        compiler_params=pltpu.CompilerParams(
            dimension_semantics=("parallel", "arbitrary"),   # core split, then batch reduction
            vmem_limit_bytes=vmem_limit),
    )(predictions, mask, log_exp)

    parts = out.reshape(ncores, 8, 128)
    total = jnp.sum(parts[:, 0, 0])
    n_sel = jnp.sum(parts[:, 0, 1])
    return jnp.where(n_sel > 0.0, total / jnp.maximum(n_sel, 1.0), jnp.float32(0.0))


def _reference(predictions, voltage, thickness, trap_params, valid_mask,
               temperature: float = 300.0):
    """Pure-JAX reference mirroring the PyTorch forward."""
    predictions = predictions.astype(jnp.float32)
    vm = valid_mask.astype(jnp.float32)
    e_a = trap_params[:, 3].astype(jnp.float32)
    efield = jnp.abs(voltage.astype(jnp.float32)) / thickness.astype(jnp.float32)
    exponent = -(e_a - 1e-29 * efield / 1.602e-19) / (K_B * temperature)
    expected = jnp.exp(jnp.clip(exponent, -20.0, 20.0))
    vp = vm[:, 1:] * vm[:, :-1]
    od = (predictions[:, 1:] - predictions[:, :-1]) * vp
    counts = jnp.maximum(vp.sum(axis=1), 1.0)
    avg = od.sum(axis=1) / counts
    sel = (avg > 0) & (counts > 1)
    d = jnp.log(jnp.maximum(avg, 1e-10)) - jnp.log(jnp.maximum(expected, 1e-10))
    n = sel.astype(jnp.float32).sum()
    return jnp.where(n > 0, jnp.sum(jnp.where(sel, d * d, 0.0)) / jnp.maximum(n, 1.0), 0.0)


if __name__ == "__main__":
    B, S = 72, 128
    key = jax.random.PRNGKey(0)
    k1, k2, k3, k4, k5 = jax.random.split(key, 5)

    # monotone-ish trap counts so rows have a positive average generation rate
    predictions = jnp.cumsum(
        jax.random.uniform(k1, (B, S), minval=0.0, maxval=0.1), axis=1
    ).astype(jnp.float32)
    voltage = jax.random.uniform(k2, (B,), minval=1.0, maxval=5.0)
    thickness = jax.random.uniform(k3, (B,), minval=2e-9, maxval=1e-8)
    trap_params = jax.random.uniform(k4, (B, 4), minval=0.5, maxval=3.0)
    valid_mask = jax.random.bernoulli(k5, p=0.8, shape=(B, S))   # native bool mask

    ref = _reference(predictions, voltage, thickness, trap_params, valid_mask)

    # 1) default VMEM-budget tiling (single full-batch block on this tiny shape)
    loss_big = jax.block_until_ready(
        generation_rate_loss(predictions, voltage, thickness, trap_params, valid_mask))
    # 2) forced small tiles: exercises the batch grid, the 2-way core split, the clamped
    #    duplicate tile, and the unpadded ragged last block (72 = 32 + 32 + 8)
    loss_tiled = jax.block_until_ready(
        generation_rate_loss(predictions, voltage, thickness, trap_params, valid_mask,
                             max_block_rows=32))

    assert jnp.allclose(loss_big, ref, rtol=1e-4, atol=1e-5), (loss_big, ref)
    assert jnp.allclose(loss_tiled, ref, rtol=1e-4, atol=1e-5), (loss_tiled, ref)

    print("KERNEL_OK")
</pallas_src>

<mosaic_0001>
module attributes {stable_mosaic.version = 11 : i64} {
  func.func @_gen_rate_loss_kernel(%arg0: i32, %arg1: i32, %arg2: memref<72x128xf32, #tpu.memory_space<vmem>>, %arg3: memref<72x128xi32, #tpu.memory_space<vmem>>, %arg4: memref<72x1xf32, #tpu.memory_space<vmem>>, %arg5: memref<8x128xf32, #tpu.memory_space<vmem>>, %arg6: memref<1x1xf32, #tpu.memory_space<vmem>>, %arg7: memref<1x1xf32, #tpu.memory_space<vmem>>) attributes {dimension_semantics = [#tpu.dimension_semantics<parallel>, #tpu.dimension_semantics<arbitrary>], iteration_bounds = array<i64: 1, 1>, scalar_prefetch = 0 : i64, scratch_operands = 2 : i64, tpu.core_type = #tpu.core_type<tc>, window_params = [{transform_indices = @transform_0, window_bounds = array<i64: 72, 128>}, {transform_indices = @transform_1, window_bounds = array<i64: 72, 128>}, {transform_indices = @transform_2, window_bounds = array<i64: 72, 1>}, {transform_indices = @transform_3, window_bounds = array<i64: 8, 128>}]} {
    %c0_i32 = arith.constant 0 : i32
    %0 = arith.cmpi eq, %arg1, %c0_i32 : i32
    %1 = arith.extui %0 : i1 to i32
    %c0_i32_0 = arith.constant 0 : i32
    %2 = arith.cmpi ne, %1, %c0_i32_0 : i32
    scf.if %2 {
      %cst_29 = arith.constant 0.000000e+00 : f32
      %61 = vector.broadcast %cst_29 : f32 to vector<1x1xf32>
      %c0_30 = arith.constant 0 : index
      %c0_31 = arith.constant 0 : index
      %62 = vector.load %arg6[%c0_30, %c0_31] : memref<1x1xf32, #tpu.memory_space<vmem>>, vector<1x1xf32>
      tpu.vector_store %arg6[%c0_30, %c0_31], %61 {strides = array<i32>} : memref<1x1xf32, #tpu.memory_space<vmem>>, vector<1x1xf32>,
      %cst_32 = arith.constant 0.000000e+00 : f32
      %63 = vector.broadcast %cst_32 : f32 to vector<1x1xf32>
      %c0_33 = arith.constant 0 : index
      %c0_34 = arith.constant 0 : index
      %64 = vector.load %arg7[%c0_33, %c0_34] : memref<1x1xf32, #tpu.memory_space<vmem>>, vector<1x1xf32>
      tpu.vector_store %arg7[%c0_33, %c0_34], %63 {strides = array<i32>} : memref<1x1xf32, #tpu.memory_space<vmem>>, vector<1x1xf32>,
    } else {
    }
    %c0 = arith.constant 0 : index
    %c0_1 = arith.constant 0 : index
    %3 = vector.load %arg2[%c0, %c0_1] : memref<72x128xf32, #tpu.memory_space<vmem>>, vector<72x128xf32>
    %c0_2 = arith.constant 0 : index
    %c0_3 = arith.constant 0 : index
    %4 = vector.load %arg3[%c0_2, %c0_3] : memref<72x128xi32, #tpu.memory_space<vmem>>, vector<72x128xi32>
    %cst = arith.constant dense<0> : vector<72x128xi32>
    %5 = arith.cmpi ne, %4, %cst : vector<72x128xi32>
    %6 = arith.extui %5 : vector<72x128xi1> to vector<72x128xi32>
    %7 = arith.sitofp %6 : vector<72x128xi32> to vector<72x128xf32>
    %c0_4 = arith.constant 0 : index
    %c0_5 = arith.constant 0 : index
    %8 = vector.load %arg4[%c0_4, %c0_5] : memref<72x1xf32, #tpu.memory_space<vmem>>, vector<72x1xf32>
    %9 = tpu.iota {dimensions = array<i32: 1>} : vector<72x128xi32>
    %c127_i32 = arith.constant 127 : i32
    %10 = vector.broadcast %c127_i32 : i32 to vector<72x128xi32>
    %11 = arith.cmpi slt, %9, %10 : vector<72x128xi32>
    %c127_i32_6 = arith.constant 127 : i32
    %12 = tpu.dynamic_rotate %7 by %c127_i32_6 dim 1 : vector<72x128xf32>, i32 -> vector<72x128xf32>
    %cst_7 = arith.constant 0.000000e+00 : f32
    %13 = vector.broadcast %cst_7 : f32 to vector<72x128xf32>
    %14 = arith.select %11, %12, %13 : vector<72x128xi1>, vector<72x128xf32>
    %c127_i32_8 = arith.constant 127 : i32
    %15 = tpu.dynamic_rotate %3 by %c127_i32_8 dim 1 : vector<72x128xf32>, i32 -> vector<72x128xf32>
    %16 = arith.mulf %7, %14 : vector<72x128xf32>
    %17 = arith.subf %15, %3 : vector<72x128xf32>
    %18 = arith.mulf %17, %16 : vector<72x128xf32>
    %cst_9 = arith.constant dense<0.000000e+00> : vector<72xf32>
    %19 = vector.multi_reduction <add>, %16, %cst_9 [1] : vector<72x128xf32> to vector<72xf32>
    %20 = vector.shape_cast %19 : vector<72xf32> to vector<72x1xf32>
    %cst_10 = arith.constant dense<0.000000e+00> : vector<72xf32>
    %21 = vector.multi_reduction <add>, %18, %cst_10 [1] : vector<72x128xf32> to vector<72xf32>
    %22 = vector.shape_cast %21 : vector<72xf32> to vector<72x1xf32>
    %cst_11 = arith.constant 1.000000e+00 : f32
    %23 = vector.broadcast %cst_11 : f32 to vector<72x1xf32>
    %24 = arith.maximumf %20, %23 : vector<72x1xf32>
    %25 = arith.divf %22, %24 : vector<72x1xf32>
    %c1_i32 = arith.constant 1 : i32
    %26 = arith.muli %arg0, %c1_i32 : i32
    %27 = arith.addi %26, %arg1 : i32
    %c72_i32 = arith.constant 72 : i32
    %28 = arith.muli %27, %c72_i32 : i32
    %c72_i32_12 = arith.constant 72 : i32
    %29 = arith.subi %c72_i32_12, %28 : i32
    %30 = tpu.iota {dimensions = array<i32: 0>} : vector<72x1xi32>
    %31 = vector.broadcast %29 : i32 to vector<72x1xi32>
    %32 = arith.cmpi slt, %30, %31 : vector<72x1xi32>
    %cst_13 = arith.constant 0.000000e+00 : f32
    %33 = vector.broadcast %cst_13 : f32 to vector<72x1xf32>
    %34 = arith.cmpf ogt, %25, %33 : vector<72x1xf32>
    %cst_14 = arith.constant 1.000000e+00 : f32
    %35 = vector.broadcast %cst_14 : f32 to vector<72x1xf32>
    %36 = arith.cmpf ogt, %20, %35 : vector<72x1xf32>
    %37 = arith.andi %34, %36 : vector<72x1xi1>
    %38 = arith.andi %37, %32 : vector<72x1xi1>
    %cst_15 = arith.constant 1.000000e-10 : f32
    %39 = vector.broadcast %cst_15 : f32 to vector<72x1xf32>
    %40 = arith.maximumf %25, %39 : vector<72x1xf32>
    %41 = math.log %40 : vector<72x1xf32>
    %42 = arith.subf %41, %8 : vector<72x1xf32>
    %43 = arith.mulf %42, %42 : vector<72x1xf32>
    %cst_16 = arith.constant 0.000000e+00 : f32
    %44 = vector.broadcast %cst_16 : f32 to vector<72x1xf32>
    %45 = arith.select %38, %43, %44 : vector<72x1xi1>, vector<72x1xf32>
    %c0_17 = arith.constant 0 : index
    %c0_18 = arith.constant 0 : index
    %46 = vector.load %arg6[%c0_17, %c0_18] : memref<1x1xf32, #tpu.memory_space<vmem>>, vector<1x1xf32>
    %cst_19 = arith.constant dense<0.000000e+00> : vector<1xf32>
    %47 = vector.multi_reduction <add>, %45, %cst_19 [0] : vector<72x1xf32> to vector<1xf32>
    %48 = vector.shape_cast %47 : vector<1xf32> to vector<1x1xf32>
    %49 = arith.addf %46, %48 : vector<1x1xf32>
    %c0_20 = arith.constant 0 : index
    %c0_21 = arith.constant 0 : index
    %50 = vector.load %arg6[%c0_20, %c0_21] : memref<1x1xf32, #tpu.memory_space<vmem>>, vector<1x1xf32>
    tpu.vector_store %arg6[%c0_20, %c0_21], %49 {strides = array<i32>} : memref<1x1xf32, #tpu.memory_space<vmem>>, vector<1x1xf32>,
    %c0_22 = arith.constant 0 : index
    %c0_23 = arith.constant 0 : index
    %51 = vector.load %arg7[%c0_22, %c0_23] : memref<1x1xf32, #tpu.memory_space<vmem>>, vector<1x1xf32>
    %52 = arith.extui %38 : vector<72x1xi1> to vector<72x1xi32>
    %53 = arith.sitofp %52 : vector<72x1xi32> to vector<72x1xf32>
    %cst_24 = arith.constant dense<0.000000e+00> : vector<1xf32>
    %54 = vector.multi_reduction <add>, %53, %cst_24 [0] : vector<72x1xf32> to vector<1xf32>
    %55 = vector.shape_cast %54 : vector<1xf32> to vector<1x1xf32>
    %56 = arith.addf %51, %55 : vector<1x1xf32>
    %c0_25 = arith.constant 0 : index
    %c0_26 = arith.constant 0 : index
    %57 = vector.load %arg7[%c0_25, %c0_26] : memref<1x1xf32, #tpu.memory_space<vmem>>, vector<1x1xf32>
    tpu.vector_store %arg7[%c0_25, %c0_26], %56 {strides = array<i32>} : memref<1x1xf32, #tpu.memory_space<vmem>>, vector<1x1xf32>,
    %c0_i32_27 = arith.constant 0 : i32
    %58 = arith.cmpi eq, %arg1, %c0_i32_27 : i32
    %59 = arith.extui %58 : i1 to i32
    %c0_i32_28 = arith.constant 0 : i32
    %60 = arith.cmpi ne, %59, %c0_i32_28 : i32
    scf.if %60 {
      %61 = tpu.iota {dimensions = array<i32: 1>} : vector<8x128xi32>
      %c0_29 = arith.constant 0 : index
      %c0_30 = arith.constant 0 : index
      %62 = vector.load %arg6[%c0_29, %c0_30] : memref<1x1xf32, #tpu.memory_space<vmem>>, vector<1x1xf32>
      %63 = vector.shape_cast %62 : vector<1x1xf32> to vector<1x1xf32>
      %64 = vector.broadcast %63 : vector<1x1xf32> to vector<8x128xf32>
      %c0_31 = arith.constant 0 : index
      %c0_32 = arith.constant 0 : index
      %65 = vector.load %arg7[%c0_31, %c0_32] : memref<1x1xf32, #tpu.memory_space<vmem>>, vector<1x1xf32>
      %66 = vector.shape_cast %65 : vector<1x1xf32> to vector<1x1xf32>
      %67 = vector.broadcast %66 : vector<1x1xf32> to vector<8x128xf32>
      %c0_i32_33 = arith.constant 0 : i32
      %68 = vector.broadcast %c0_i32_33 : i32 to vector<8x128xi32>
      %69 = arith.cmpi eq, %61, %68 : vector<8x128xi32>
      %c1_i32_34 = arith.constant 1 : i32
      %70 = vector.broadcast %c1_i32_34 : i32 to vector<8x128xi32>
      %71 = arith.cmpi eq, %61, %70 : vector<8x128xi32>
      %cst_35 = arith.constant 0.000000e+00 : f32
      %72 = vector.broadcast %cst_35 : f32 to vector<8x128xf32>
      %73 = arith.select %71, %67, %72 : vector<8x128xi1>, vector<8x128xf32>
      %74 = arith.select %69, %64, %73 : vector<8x128xi1>, vector<8x128xf32>
      %c0_36 = arith.constant 0 : index
      %c0_37 = arith.constant 0 : index
      %75 = vector.load %arg5[%c0_36, %c0_37] : memref<8x128xf32, #tpu.memory_space<vmem>>, vector<8x128xf32>
      tpu.vector_store %arg5[%c0_36, %c0_37], %74 {strides = array<i32>} : memref<8x128xf32, #tpu.memory_space<vmem>>, vector<8x128xf32>,
    } else {
    }
    return
  }
  func.func @transform_0(%arg0: i32, %arg1: i32) -> (i32, i32) {
    %c1_i32 = arith.constant 1 : i32
    %0 = arith.muli %arg0, %c1_i32 : i32
    %1 = arith.addi %0, %arg1 : i32
    %c0_i32 = arith.constant 0 : i32
    %2 = arith.minsi %1, %c0_i32 : i32
    %c0_i32_0 = arith.constant 0 : i32
    %c0_i32_1 = arith.constant 0 : i32
    return %2, %c0_i32_0 : i32, i32
  }
  func.func @transform_1(%arg0: i32, %arg1: i32) -> (i32, i32) {
    %c1_i32 = arith.constant 1 : i32
    %0 = arith.muli %arg0, %c1_i32 : i32
    %1 = arith.addi %0, %arg1 : i32
    %c0_i32 = arith.constant 0 : i32
    %2 = arith.minsi %1, %c0_i32 : i32
    %c0_i32_0 = arith.constant 0 : i32
    %c0_i32_1 = arith.constant 0 : i32
    return %2, %c0_i32_0 : i32, i32
  }
  func.func @transform_2(%arg0: i32, %arg1: i32) -> (i32, i32) {
    %c1_i32 = arith.constant 1 : i32
    %0 = arith.muli %arg0, %c1_i32 : i32
    %1 = arith.addi %0, %arg1 : i32
    %c0_i32 = arith.constant 0 : i32
    %2 = arith.minsi %1, %c0_i32 : i32
    %c0_i32_0 = arith.constant 0 : i32
    %c0_i32_1 = arith.constant 0 : i32
    return %2, %c0_i32_0 : i32, i32
  }
  func.func @transform_3(%arg0: i32, %arg1: i32) -> (i32, i32) {
    %c0_i32 = arith.constant 0 : i32
    %c0_i32_0 = arith.constant 0 : i32
    return %arg0, %c0_i32 : i32, i32
  }
}

</mosaic_0001>

<bundles_post_ra>
// kernel: tpu_custom_call.1
= control target key start
LH: loop header
LB: loop body
LE: loop exit
PB: predicated region body
PF: predicated region fallthrough
CT: control target
= control target key end

     0   :  { %v650_v6 = vmov 0.0   ;;  %s651_s28 = smov 127   ;;  %s972_s0 = inlined_call_operand.vmem [shape: f32[72,128], index: 0, kind: input, shape index: {}]   ;;  %s973_s1 = inlined_call_operand.vmem [shape: s32[72,128], index: 1, kind: input, shape index: {}]   ;;  %s974_s2 = inlined_call_operand.vmem [shape: f32[72,1], index: 2, kind: input, shape index: {}]   ;;  %s975_s3 = inlined_call_operand.hbm [shape: f32[8,128], index: 3, kind: output, shape index: {}]  }
   0x1   :  { %v131_v0 = vld [vmem:[%s973_s1 + $0x20] sm:$0xff]  ;;  %v132_v1 = vld [vmem:[%s973_s1 + $0x28] sm:$0xff]  ;;  %v133_v4 = vld [vmem:[%s973_s1 + $0x30] sm:$0xff] }
   0x2   :  { %v127_v2 = vld [vmem:[%s973_s1] sm:$0xff]  ;;  %vm140_vm0 = vcmp.ne.s32.totalorder %v131_v0, 0  ;;  %vm141_vm1 = vcmp.ne.s32.totalorder %v132_v1, 0  ;;  %v128_v3 = vld [vmem:[%s973_s1 + $0x8] sm:$0xff]  ;;  %v134_v5 = vld [vmem:[%s973_s1 + $0x38] sm:$0xff]  ;;  %vm142_vm4 = vcmp.ne.s32.totalorder %v133_v4, 0 }
   0x3   :  { %vm136_vm2 = vcmp.ne.s32.totalorder %v127_v2, 0  ;;  %v693_v7 = vsel %vm140_vm0, 1.0, %v650_v6  ;;  %v696_v8 = vsel %vm141_vm1, 1.0, %v650_v6  ;;  %vm137_vm3 = vcmp.ne.s32.totalorder %v128_v3, 0  ;;  %v129_v10 = vld [vmem:[%s973_s1 + $0x10] sm:$0xff]  ;;  %v130_v11 = vld [vmem:[%s973_s1 + $0x18] sm:$0xff] }
   0x4   :  { %v546_v9 = vsel %vm136_vm2, 1.0, %v650_v6  ;;  %v580_v12 = vpack.i.bf16 %v696_v8, %v693_v7  ;;  %v547_v13 = vsel %vm137_vm3, 1.0, %v650_v6  ;;  %vm143_vm5 = vcmp.ne.s32.totalorder %v134_v5, 0  ;;  %v135_v19 = vld [vmem:[%s973_s1 + $0x40] sm:$0xff] }
   0x5   :  { %v570_v14 = vpack.i.bf16 %v547_v13, %v546_v9  ;;  %v709_v15 = vsel %vm142_vm4, 1.0, %v650_v6  ;;  %v712_v16 = vsel %vm143_vm5, 1.0, %v650_v6  ;;  %vm138_vm6 = vcmp.ne.s32.totalorder %v129_v10, 0 }
   0x6   :  { %581 = vrot.lane.b32.xlu1 %v580_v12, %s651_s28  ;;  %v585_v17 = vpack.i.bf16 %v712_v16, %v709_v15  ;;  %vm139_vm7 = vcmp.ne.s32.totalorder %v130_v11, 0  ;;  %v548_v18 = vsel %vm138_vm6, 1.0, %v650_v6 }
   0x7   :  { %571 = vrot.lane.b32.xlu0 %v570_v14, %s651_s28  ;;  %v549_v20 = vsel %vm139_vm7, 1.0, %v650_v6 }
   0x8   :  { %8 = vsyncpa [#allocation5], 0  ;;  %v575_v21 = vpack.i.bf16 %v549_v20, %v548_v18  ;;  %vm144_vm8 = vcmp.ne.s32.totalorder %v135_v19, 0  ;;  %v728_v22 = vld [vmem:[%s972_s0] sm:$0xff]  ;;  %v737_v24 = vld [vmem:[%s972_s0 + $0x10] sm:$0xff]  ;;  %v172_v32 = vlaneseq  ;;  %vm115_vm10 = vcmask 0  }
   0x9   :  { %v554_v23 = vsel %vm144_vm8, 1.0, %v650_v6  ;;  %v742_v25 = vld [vmem:[%s972_s0 + $0x8] sm:$0xff]  ;;  %v751_v26 = vld [vmem:[%s972_s0 + $0x20] sm:$0xff]  ;;  %v756_v27 = vld [vmem:[%s972_s0 + $0x18] sm:$0xff]  ;;  %116 = vst.msk [vmem:[#allocation2] sm:$0x1] %vm115_vm10, %v650_v6 }
   0xa   :  { %586 = vrot.lane.b32.xlu1 %v585_v17, %s651_s28  ;;  %v765_v28 = vld [vmem:[%s972_s0 + $0x30] sm:$0xff]  ;;  %v770_v29 = vld [vmem:[%s972_s0 + $0x28] sm:$0xff]  ;;  %v779_v30 = vld [vmem:[%s972_s0 + $0x40] sm:$0xff]  ;;  %v790_v33 = vand.u32 127, %v172_v32  ;;  %117 = vst.msk [vmem:[#allocation3] sm:$0x1] %vm115_vm10, %v650_v6 }
   0xb   :  { %576 = vrot.lane.b32.xlu0 %v575_v21, %s651_s28  ;;  %v784_v31 = vld [vmem:[%s972_s0 + $0x38] sm:$0xff] }
   0xc   :  { %vm174_vm9 = vcmp.lt.s32.totalorder %v790_v33, 127 }
   0xe   :  { %202 = vrot.lane.b32.xlu1 %v728_v22, %s651_s28 }
   0xf   :  { %191 = vrot.lane.b32.xlu0 %v554_v23, %s651_s28 }
  0x12   :  { %206 = vrot.lane.b32.xlu1 %v737_v24, %s651_s28 }
  0x13   :  { %204 = vrot.lane.b32.xlu0 %v742_v25, %s651_s28 }
  0x16   :  { %210 = vrot.lane.b32.xlu1 %v751_v26, %s651_s28 }
  0x17   :  { %208 = vrot.lane.b32.xlu0 %v756_v27, %s651_s28 }
  0x1a   :  { %214 = vrot.lane.b32.xlu1 %v765_v28, %s651_s28 }
  0x1b   :  { %212 = vrot.lane.b32.xlu0 %v770_v29, %s651_s28 }
  0x1e   :  { %218 = vrot.lane.b32.xlu1 %v779_v30, %s651_s28 }
  0x1f   :  { %216 = vrot.lane.b32.xlu0 %v784_v31, %s651_s28 }
  0x78   :  { %v582_v34 = vpop.permute.xlu1 %581 }
  0x79   :  { %v583_v35 = vunpack.i.l.bf16 %v582_v34  ;;  %v572_v36 = vpop.permute.xlu0 %571  ;;  %v584_v54 = vunpack.i.h.bf16 %v582_v34 }
  0x7a   :  { %v574_v37 = vunpack.i.h.bf16 %v572_v36  ;;  %v573_v38 = vunpack.i.l.bf16 %v572_v36 }
  0x7b   :  { %v197_v42 = vsel %vm174_vm9, %v583_v35, 0.0  ;;  %v198_v62 = vsel %vm174_vm9, %v584_v54, 0.0 }
  0x7c   :  { %v587_v39 = vpop.permute.xlu1 %586  ;;  %v194_v40 = vsel %vm174_vm9, %v574_v37, 0.0  ;;  %v193_v41 = vsel %vm174_vm9, %v573_v38, 0.0  ;;  %v224_v49 = vmul.f32 %v693_v7, %v197_v42  ;;  %v225_v3 = vmul.f32 %v696_v8, %v198_v62 }
  0x7d   :  { %v588_v43 = vunpack.i.l.bf16 %v587_v39  ;;  %v577_v44 = vpop.permute.xlu0 %576  ;;  %v221_v45 = vmul.f32 %v547_v13, %v194_v40  ;;  %v220_v46 = vmul.f32 %v546_v9, %v193_v41  ;;  %v589_v61 = vunpack.i.h.bf16 %v587_v39 }
  0x7e   :  { %v579_v47 = vunpack.i.h.bf16 %v577_v44  ;;  %v578_v48 = vunpack.i.l.bf16 %v577_v44 }
  0x7f   :  { %249 = vadd.xlane.f32.xlu1 %v221_v45  ;;  %247 = vadd.xlane.f32.xlu0 %v220_v46  ;;  %v199_v51 = vsel %vm174_vm9, %v588_v43, 0.0  ;;  %v200_v4 = vsel %vm174_vm9, %v589_v61, 0.0 }
  0x80   :  { %v195_v50 = vsel %vm174_vm9, %v578_v48, 0.0  ;;  %v203_v55 = vpop.permute.xlu1 %202  ;;  %v196_v56 = vsel %vm174_vm9, %v579_v47, 0.0  ;;  %v226_v57 = vmul.f32 %v709_v15, %v199_v51  ;;  %v227_v11 = vmul.f32 %v712_v16, %v200_v4 }
  0x81   :  { %v192_v52 = vpop.permute.xlu0 %191  ;;  %v222_v53 = vmul.f32 %v548_v18, %v195_v50  ;;  %v223_v60 = vmul.f32 %v549_v20, %v196_v56  ;;  %v229_v5 = vsub.f32 %v203_v55, %v728_v22 }
  0x82   :  { %v201_v58 = vsel %vm174_vm9, %v192_v52, 0.0 }
  0x83   :  { %255 = vadd.xlane.f32.xlu1 %v224_v49  ;;  %251 = vadd.xlane.f32.xlu0 %v222_v53  ;;  %v228_v63 = vmul.f32 %v554_v23, %v201_v58  ;;  %v238_v15 = vmul.f32 %v229_v5, %v220_v46 }
  0x84   :  { %v207_v0 = vpop.permute.xlu1 %206 }
  0x85   :  { %v205_v59 = vpop.permute.xlu0 %204  ;;  %v231_v13 = vsub.f32 %v207_v0, %v737_v24 }
  0x86   :  { %v230_v1 = vsub.f32 %v205_v59, %v742_v25 }
  0x87   :  { %259 = vadd.xlane.f32.xlu1 %v226_v57  ;;  %253 = vadd.xlane.f32.xlu0 %v223_v60  ;;  %v240_v22 = vmul.f32 %v231_v13, %v222_v53 }
  0x88   :  { %v239_v10 = vmul.f32 %v230_v1, %v221_v45  ;;  %v211_v12 = vpop.permute.xlu1 %210 }
  0x89   :  { %v209_v2 = vpop.permute.xlu0 %208  ;;  %v233_v19 = vsub.f32 %v211_v12, %v751_v26  ;;  %v652_v26 = vmov 0  }
  0x8a   :  { %v232_v7 = vsub.f32 %v209_v2, %v756_v27  ;;  %590 = vset.pattern.permute.xlu1 %v652_v26  ;;  %591 = vset.pattern.permute.xlu0 %v652_v26 }
  0x8b   :  { %263 = vadd.xlane.f32.xlu1 %v228_v63  ;;  %257 = vadd.xlane.f32.xlu0 %v225_v3  ;;  %v242_v24 = vmul.f32 %v233_v19, %v224_v49 }
  0x8c   :  { %v241_v14 = vmul.f32 %v232_v7, %v223_v60  ;;  %v215_v18 = vpop.permute.xlu1 %214 }
  0x8d   :  { %v213_v9 = vpop.permute.xlu0 %212  ;;  %v235_v16 = vsub.f32 %v215_v18, %v765_v28 }
  0x8e   :  { %v234_v8 = vsub.f32 %v213_v9, %v770_v29 }
  0x8f   :  { %267 = vadd.xlane.f32.xlu1 %v239_v10  ;;  %261 = vadd.xlane.f32.xlu0 %v227_v11  ;;  %v244_v29 = vmul.f32 %v235_v16, %v226_v57  ;;  %v169_v10 = vld [vmem:[%s974_s2 + $0x30] sm:$0xff] }
  0x90   :  { %v243_v21 = vmul.f32 %v234_v8, %v225_v3  ;;  %v219_v25 = vpop.permute.xlu1 %218 }
  0x91   :  { %v217_v17 = vpop.permute.xlu0 %216  ;;  %v237_v27 = vsub.f32 %v219_v25, %v779_v30 }
  0x92   :  { %v236_v20 = vsub.f32 %v217_v17, %v784_v31 }
  0x93   :  { %271 = vadd.xlane.f32.xlu1 %v241_v14  ;;  %265 = vadd.xlane.f32.xlu0 %v238_v15  ;;  %v246_v32 = vmul.f32 %v237_v27, %v228_v63 }
  0x94   :  { %v245_v23 = vmul.f32 %v236_v20, %v227_v11 }
  0x97   :  { %275 = vadd.xlane.f32.xlu1 %v243_v21  ;;  %269 = vadd.xlane.f32.xlu0 %v240_v22 }
  0x9b   :  { %279 = vadd.xlane.f32.xlu1 %v245_v23  ;;  %273 = vadd.xlane.f32.xlu0 %v242_v24 }
  0x9f   :  { %277 = vadd.xlane.f32.xlu0 %v244_v29 }
  0xa3   :  { %281 = vadd.xlane.f32.xlu0 %v246_v32 }
 0x108   :  { %v250_v28 = vpop.xlane.xlu1 %249  ;;  %v248_v31 = vpop.xlane.xlu0 %247 }
 0x109   :  { %v284_v34 = vmax.f32 %v250_v28, 1.0  ;;  %v283_v35 = vmax.f32 %v248_v31, 1.0  ;;  %vm343_vm12 = vcmp.gt.f32.partialorder %v250_v28, 1.0  ;;  %vm342_vm13 = vcmp.gt.f32.partialorder %v248_v31, 1.0  ;;  %v164_v31 = vld [vmem:[%s974_s2 + $0x8] sm:$0xff] }
 0x10b   :  { %592 = vrcp.f32 %v284_v34 }
 0x10c   :  { %v828_v30 = vpop.xlane.xlu1 %255  ;;  %v252_v36 = vpop.xlane.xlu0 %251  ;;  %594 = vrcp.f32 %v283_v35 }
 0x10d   :  { %v285_v37 = vmax.f32 %v252_v36, 1.0  ;;  %v287_v41 = vmax.f32 %v828_v30, 1.0  ;;  %vm344_vm1 = vcmp.gt.f32.partialorder %v252_v36, 1.0  ;;  %vm346_vm7 = vcmp.gt.f32.partialorder %v828_v30, 1.0 }
 0x10f   :  { %596 = vrcp.f32 %v285_v37 }
 0x110   :  { %v830_v38 = vpop.xlane.xlu1 %259  ;;  %v254_v39 = vpop.xlane.xlu0 %253 }
 0x111   :  { %v286_v40 = vmax.f32 %v254_v39, 1.0  ;;  %v289_v45 = vmax.f32 %v830_v38, 1.0  ;;  %vm345_vm3 = vcmp.gt.f32.partialorder %v254_v39, 1.0 }
 0x113   :  { %598 = vrcp.f32 %v286_v40 }
 0x114   :  { %v833_v42 = vpop.xlane.xlu1 %263  ;;  %v835_v43 = vpop.xlane.xlu0 %257  ;;  %600 = vrcp.f32 %v287_v41 }
 0x115   :  { %v288_v44 = vmax.f32 %v835_v43, 1.0  ;;  %v291_v51 = vmax.f32 %v833_v42, 1.0  ;;  %vm347_vm9 = vcmp.gt.f32.partialorder %v835_v43, 1.0 }
 0x117   :  { %602 = vrcp.f32 %v288_v44 }
 0x118   :  { %v593_v46 = vpop.eup %592  ;;  %v268_v47 = vpop.xlane.xlu1 %267  ;;  %604 = vrcp.f32 %v289_v45 }
 0x119   :  { %v839_v48 = vpop.xlane.xlu0 %261  ;;  %v295_v49 = vmul.f32 %v593_v46, %v268_v47  ;;  %v595_v53 = vpop.eup %594 }
 0x11a   :  { %v290_v50 = vmax.f32 %v839_v48, 1.0 }
 0x11b   :  { %v370_v52 = vmax.f32 %v295_v49, 1e-10  ;;  %vm334_vm11 = vcmp.gt.f32.partialorder %v295_v49, 0.0 }
 0x11c   :  { %606 = vrcp.f32 %v290_v50  ;;  %v272_v54 = vpop.xlane.xlu1 %271  ;;  %vm843_vm14 = vmand %vm334_vm11, %vm343_vm12  ;;  %v597_v59 = vpop.eup %596 }
 0x11d   :  { %v266_v55 = vpop.xlane.xlu0 %265  ;;  %608 = vlog2.f32 %v370_v52  ;;  %v556_v3 = vsel %vm843_vm14, 1.0, %v650_v6 }
 0x11e   :  { %v293_v56 = vmul.f32 %v595_v53, %v266_v55  ;;  %610 = vrcp.f32 %v291_v51 }
 0x120   :  { %vm333_vm15 = vcmp.gt.f32.partialorder %v293_v56, 0.0  ;;  %v369_v58 = vmax.f32 %v293_v56, 1e-10  ;;  %v599_v62 = vpop.eup %598  ;;  %v276_v2 = vpop.xlane.xlu1 %275 }
 0x121   :  { %vm847_vm0 = vmand %vm333_vm15, %vm342_vm13  ;;  %v270_v61 = vpop.xlane.xlu0 %269  ;;  %v299_v1 = vmul.f32 %v599_v62, %v272_v54  ;;  %v601_v5 = vpop.eup %600  ;;  %vm349_vm15 = vcmp.gt.f32.partialorder %v839_v48, 1.0  ;;  %v163_v48 = vld [vmem:[%s974_s2] sm:$0xff]  ;;  %v166_v62 = vld [vmem:[%s974_s2 + $0x18] sm:$0xff] }
 0x122   :  { %612 = vlog2.f32 %v369_v58  ;;  %v555_v63 = vsel %vm847_vm0, 1.0, %v650_v6  ;;  %v297_v0 = vmul.f32 %v597_v59, %v270_v61  ;;  %v165_v59 = vld [vmem:[%s974_s2 + $0x10] sm:$0xff] }
 0x123   :  { %vm336_vm4 = vcmp.gt.f32.partialorder %v299_v1, 0.0  ;;  %v372_v7 = vmax.f32 %v299_v1, 1e-10  ;;  %v470_v9 = vadd.f32 %v556_v3, %v555_v63 }
 0x124   :  { %vm335_vm2 = vcmp.gt.f32.partialorder %v297_v0, 0.0  ;;  %v371_v4 = vmax.f32 %v297_v0, 1e-10  ;;  %v603_v12 = vpop.eup %602  ;;  %vm861_vm6 = vmand %vm336_vm4, %vm345_vm3  ;;  %v280_v16 = vpop.xlane.xlu1 %279  ;;  %vm348_vm3 = vcmp.gt.f32.partialorder %v830_v38, 1.0 }
 0x125   :  { %vm857_vm5 = vmand %vm335_vm2, %vm344_vm1  ;;  %v274_v11 = vpop.xlane.xlu0 %273  ;;  %v303_v15 = vmul.f32 %v603_v12, %v276_v2  ;;  %v605_v18 = vpop.eup %604  ;;  %v558_v19 = vsel %vm861_vm6, 1.0, %v650_v6  ;;  %v167_v12 = vld [vmem:[%s974_s2 + $0x20] sm:$0xff] }
 0x126   :  { %614 = vlog2.f32 %v371_v4  ;;  %v557_v8 = vsel %vm857_vm5, 1.0, %v650_v6  ;;  %v301_v14 = vmul.f32 %v601_v5, %v274_v11 }
 0x127   :  { %616 = vlog2.f32 %v372_v7  ;;  %v471_v17 = vadd.f32 %v557_v8, %v470_v9  ;;  %vm338_vm11 = vcmp.gt.f32.partialorder %v303_v15, 0.0  ;;  %v374_v22 = vmax.f32 %v303_v15, 1e-10 }
 0x128   :  { %vm337_vm8 = vcmp.gt.f32.partialorder %v301_v14, 0.0  ;;  %v373_v20 = vmax.f32 %v301_v14, 1e-10  ;;  %vm877_vm13 = vmand %vm338_vm11, %vm347_vm9  ;;  %v168_v14 = vld [vmem:[%s974_s2 + $0x28] sm:$0xff] }
 0x129   :  { %v607_v21 = vpop.eup %606  ;;  %v472_v23 = vadd.f32 %v558_v19, %v471_v17  ;;  %vm873_vm12 = vmand %vm337_vm8, %vm346_vm7  ;;  %v278_v25 = vpop.xlane.xlu0 %277  ;;  %v560_v34 = vsel %vm877_vm13, 1.0, %v650_v6  ;;  %vm350_vm8 = vcmp.gt.f32.partialorder %v833_v42, 1.0 }
 0x12a   :  { %v307_v29 = vmul.f32 %v607_v21, %v280_v16  ;;  %618 = vlog2.f32 %v373_v20  ;;  %v559_v32 = vsel %vm873_vm12, 1.0, %v650_v6  ;;  %v305_v26 = vmul.f32 %v605_v18, %v278_v25  ;;  %v609_v28 = vpop.eup %608 }
 0x12b   :  { %620 = vlog2.f32 %v374_v22  ;;  %v473_v35 = vadd.f32 %v559_v32, %v472_v23  ;;  %v381_v30 = vmul.f32 0.6931472, %v609_v28  ;;  %v611_v37 = vpop.eup %610 }
 0x12c   :  { %vm340_vm1 = vcmp.gt.f32.partialorder %v307_v29, 0.0  ;;  %v376_v36 = vmax.f32 %v307_v29, 1e-10  ;;  %vm339_vm2 = vcmp.gt.f32.partialorder %v305_v26, 0.0  ;;  %v375_v41 = vmax.f32 %v305_v26, 1e-10 }
 0x12d   :  { %vm892_vm4 = vmand %vm340_vm1, %vm349_vm15  ;;  %v474_v40 = vadd.f32 %v560_v34, %v473_v35  ;;  %v282_v43 = vpop.xlane.xlu0 %281  ;;  %v397_v44 = vsub.f32 %v381_v30, %v164_v31  ;;  %vm424_vm15 = vcmask 7168   ;;  %v170_v26 = vld [vmem:[%s974_s2 + $0x38] sm:$0xff] }
 0x12e   :  { %622 = vlog2.f32 %v376_v36  ;;  %vm896_vm7 = vmand %vm339_vm2, %vm348_vm3  ;;  %v309_v46 = vmul.f32 %v611_v37, %v282_v43  ;;  %v562_v51 = vsel %vm892_vm4, 1.0, %v650_v6 }
 0x12f   :  { %v613_v47 = vpop.eup %612  ;;  %624 = vlog2.f32 %v375_v41  ;;  %v561_v38 = vsel %vm896_vm7, 1.0, %v650_v6  ;;  %v406_v54 = vmul.f32 %v397_v44, %v397_v44 }
 0x130   :  { %v379_v49 = vmul.f32 0.6931472, %v613_v47  ;;  %v475_v50 = vadd.f32 %v561_v38, %v474_v40  ;;  %vm341_vm9 = vcmp.gt.f32.partialorder %v309_v46, 0.0  ;;  %v377_v53 = vmax.f32 %v309_v46, 1e-10 }
 0x131   :  { %vm910_vm11 = vmand %vm341_vm9, %vm350_vm8  ;;  %v415_v3 = vsel %vm843_vm14, %v406_v54, 0.0  ;;  %vm510_vm14 = vcmp.eq.s32.totalorder %v790_v33, 1 }
 0x132   :  { %v396_v55 = vsub.f32 %v379_v49, %v163_v48  ;;  %v476_v56 = vadd.f32 %v562_v51, %v475_v50  ;;  %v563_v58 = vsel %vm910_vm11, 1.0, %v650_v6  ;;  %626 = vlog2.f32 %v377_v53  ;;  %v171_v51 = vld [vmem:[%s974_s2 + $0x40] sm:$0xff]  ;;  %s653_s2 = smov [#allocation4]  }
 0x133   :  { %v615_v42 = vpop.eup %614  ;;  %v426_v60 = vsel %vm424_vm15, %v415_v3, 0.0  ;;  %v451_v53 = vld [vmem:[#allocation3] sm:$0x1]  ;;  %s520_s10 = sshll.u32 %s653_s2, 4  ;;  %s521_s10 = int_to_ptr.vmem [resolvable:$true] %s520_s10 }
 0x134   :  { %v617_v61 = vpop.eup %616  ;;  %v405_v63 = vmul.f32 %v396_v55, %v396_v55  ;;  %v383_v0 = vmul.f32 0.6931472, %v615_v42  ;;  %v477_v1 = vadd.f32 %v563_v58, %v476_v56  ;;  %s628_s11 = scalar_lea.vmem %s521_s10, 128  ;;  %p633_p1 = scmp.lt.s32.totalorder %s521_s10, %s521_s10 }
 0x135   :  { %v385_v2 = vmul.f32 0.6931472, %v617_v61  ;;  %p629_p0 = scmp.ne.s32.totalorder %s521_s10, %s628_s11  ;;  %p634_p2 = scmp.lt.s32.totalorder %s628_s11, %s628_s11 }
 0x136   :  { %v414_v6 = vsel %vm847_vm0, %v405_v63, 0.0  ;;  %v398_v4 = vsub.f32 %v383_v0, %v165_v59  ;;  %v478_v5 = vrot.slane %v477_v1, 4  ;;  %vm509_vm0 = vcmp.eq.s32.totalorder %v790_v33, 0 }
 0x137   :  { %v619_v7 = vpop.eup %618  ;;  %v399_v9 = vsub.f32 %v385_v2, %v166_v62  ;;  %v425_v11 = vsel %vm424_vm15, %v414_v6, 0.0  ;;  %p635_p3 = por %p634_p2, %p633_p1 }
 0x138   :  { %v621_v8 = vpop.eup %620  ;;  %v407_v57 = vmul.f32 %v398_v4, %v398_v4  ;;  %v387_v15 = vmul.f32 0.6931472, %v619_v7  ;;  %v479_v17 = vadd.f32 %v478_v5, %v477_v1  ;;  %v427_v20 = vadd.f32 %v426_v60, %v425_v11 }
 0x139   :  { %v408_v18 = vmul.f32 %v399_v9, %v399_v9  ;;  %v389_v19 = vmul.f32 0.6931472, %v621_v8  ;;  %p636_p4 = pnand %p635_p3, %p629_p0 }
 0x13a   :  { %v416_v21 = vsel %vm857_vm5, %v407_v57, 0.0  ;;  %v400_v22 = vsub.f32 %v387_v15, %v167_v12  ;;  %v480_v16 = vrot.slane %v479_v17, 2  ;;  %v423_v12 = vld [vmem:[#allocation2] sm:$0x1] }
 0x13b   :  { %v623_v23 = vpop.eup %622  ;;  %v417_v25 = vsel %vm861_vm6, %v408_v18, 0.0  ;;  %v401_v29 = vsub.f32 %v389_v19, %v168_v14  ;;  %v428_v32 = vsel %vm424_vm15, %v416_v21, 0.0 }
 0x13c   :  { %v625_v28 = vpop.eup %624  ;;  %v429_v31 = vadd.f32 %v428_v32, %v427_v20  ;;  %v393_v34 = vmul.f32 0.6931472, %v623_v23  ;;  %v409_v35 = vmul.f32 %v400_v22, %v400_v22  ;;  %v430_v30 = vsel %vm424_vm15, %v417_v25, 0.0 }
 0x13d   :  { %v410_v36 = vmul.f32 %v401_v29, %v401_v29  ;;  %v391_v13 = vmul.f32 0.6931472, %v625_v28  ;;  %v481_v37 = vadd.f32 %v480_v16, %v479_v17 }
 0x13e   :  { %v403_v40 = vsub.f32 %v393_v34, %v170_v26  ;;  %v431_v41 = vadd.f32 %v430_v30, %v429_v31  ;;  %v418_v43 = vsel %vm873_vm12, %v409_v35, 0.0 }
 0x13f   :  { %v419_v44 = vsel %vm877_vm13, %v410_v36, 0.0  ;;  %v432_v46 = vsel %vm424_vm15, %v418_v43, 0.0  ;;  %v402_v47 = vsub.f32 %v391_v13, %v169_v10  ;;  %v482_v48 = vrot.slane %v481_v37, 1  ;;  %v627_v38 = vpop.eup %626 }
 0x140   :  { %v412_v49 = vmul.f32 %v403_v40, %v403_v40  ;;  %v433_v50 = vadd.f32 %v432_v46, %v431_v41  ;;  %v434_v54 = vsel %vm424_vm15, %v419_v44, 0.0  ;;  %v395_v24 = vmul.f32 0.6931472, %v627_v38 }
 0x141   :  { %v411_v55 = vmul.f32 %v402_v47, %v402_v47  ;;  %v483_v56 = vadd.f32 %v482_v48, %v481_v37 }
 0x142   :  { %v435_v58 = vadd.f32 %v434_v54, %v433_v50  ;;  %v421_v27 = vsel %vm892_vm4, %v412_v49, 0.0  ;;  %v404_v59 = vsub.f32 %v395_v24, %v171_v51 }
 0x143   :  { %v420_v42 = vsel %vm896_vm7, %v411_v55, 0.0  ;;  %v484_v61 = vadd.f32 %v483_v56, %v451_v53  ;;  %v438_v1 = vsel %vm424_vm15, %v421_v27, 0.0 }
 0x144   :  { %v436_v62 = vsel %vm424_vm15, %v420_v42, 0.0  ;;  %v413_v0 = vmul.f32 %v404_v59, %v404_v59 }
 0x145   :  { %v437_v63 = vadd.f32 %v436_v62, %v435_v58  ;;  %485 = vst.msk [vmem:[#allocation3] sm:$0x1] %vm115_vm10, %v484_v61 }
 0x146   :  { %v422_v3 = vsel %vm910_vm11, %v413_v0, 0.0 }
 0x147   :  { %v439_v2 = vadd.f32 %v438_v1, %v437_v63  ;;  %v440_v39 = vsel %vm424_vm15, %v422_v3, 0.0 }
 0x149   :  { %v441_v6 = vadd.f32 %v440_v39, %v439_v2 }
 0x14b   :  { %v442_v4 = vrot.slane %v441_v6, 4 }
 0x14c   :  { %v565_v45 = vld [vmem:[#allocation3] ss:$0 sm:$0xff] }
 0x14d   :  { %v443_v5 = vadd.f32 %v442_v4, %v441_v6  ;;  %506 = vperm.xlu1 %590, %v565_v45  }
 0x14f   :  { %v444_v7 = vrot.slane %v443_v5, 2 }
 0x151   :  { %v445_v9 = vadd.f32 %v444_v7, %v443_v5 }
 0x153   :  { %v446_v11 = vrot.slane %v445_v9, 1 }
 0x155   :  { %v447_v8 = vadd.f32 %v446_v11, %v445_v9 }
 0x157   :  { %v448_v14 = vadd.f32 %v447_v8, %v423_v12 }
 0x159   :  { %450 = vst.msk [vmem:[#allocation2] sm:$0x1] %vm115_vm10, %v448_v14 }
 0x160   :  { %v564_v57 = vld [vmem:[#allocation2] ss:$0 sm:$0xff] }
 0x161   :  { %496 = vperm.xlu0 %591, %v564_v57  }
 0x1c8   :  { %v507_v52 = vpop.permute.xlu1 %506 }
 0x1c9   :  { %v511_v15 = vsel %vm510_vm14, %v507_v52, 0.0 }
 0x1dc   :  { %v497_v17 = vpop.permute.xlu0 %496 }
 0x1dd   :  { %v512_v60 = vsel %vm509_vm0, %v497_v17, %v511_v15 }
 0x1de   :  { %513 = vst [vmem:[#allocation4] sm:$0xff] %v512_v60 }
 0x1df   :  { %639 = shalt.err (!%p636_p4)
}
 0x1e0   :  { %523 = dma.vmem_to_hbm [thread:$0]  %s521_s10, 128, %s975_s3, [#allocation5]  }
 0x1e1   :  { %648 = dma.done.wait [#allocation5], 128  }
 0x1e2   :  { %649 = vsyncadd [#allocation5], 4294967168 }
 0x1e3   :  { %527 = vsyncpa [#allocation5], 1 }

</bundles_post_ra>
